<compile_context>
chip_gen: v7x
topology: tpu7x:2x2x1
jax: 0.10.0
libtpu: 0.0.40
codegen_flags: <defaults>
</compile_context>

<pallas_src>
import jax
import jax.numpy as jnp
from jax.experimental import pallas as pl
from jax.experimental.pallas import tpu as pltpu


def _round_up(x, m):
    return (x + m - 1) // m * m


def _vmem_capacity_bytes():
    # Capability probe only; default to the smallest per-TensorCore VMEM (v7x).
    try:
        return int(pltpu.get_tpu_info().vmem_capacity_bytes)
    except Exception:
        return 64 << 20


def mlp_kernel(x_ref, w1_ref, b1_ref, w2_ref, b2_ref, o_ref, acc_ref):
    """One (token-tile, I-chunk) grid step.

    x_ref : (tm, E)   input token tile (original dtype; cast to MXU dtype here)
    w1_ref: (E, tk)   dense weight chunk       (= PyTorch dense.weight.T cols)
    b1_ref: (1, tk)   dense bias chunk (f32)
    w2_ref: (tk, E)   output_proj weight chunk (= PyTorch output_proj.weight.T rows)
    b2_ref: (1, E)    output_proj bias (f32)
    o_ref : (tm, E)   output token tile (written on the last I-chunk)
    acc_ref:(tm, E)   f32 accumulator, resident across the I-chunk axis
    """
    k = pl.program_id(1)

    @pl.when(k == 0)
    def _():
        acc_ref[...] = jnp.zeros_like(acc_ref)

    # dense chunk: MXU matmul (bf16 inputs, f32 accumulation); bias + SiLU f32.
    x = x_ref[...].astype(w1_ref.dtype)
    h = jnp.dot(x, w1_ref[...], preferred_element_type=jnp.float32)
    h = h + b1_ref[...]
    h = h * jax.nn.sigmoid(h)                       # SiLU(z) = z * sigmoid(z)

    # output-projection chunk.  Intentional mixed precision: f32 SiLU output
    # is downcast to the weight dtype for the MXU; accumulation stays f32.
    acc_ref[...] += jnp.dot(h.astype(w2_ref.dtype), w2_ref[...],
                            preferred_element_type=jnp.float32)

    @pl.when(k == pl.num_programs(1) - 1)
    def _():
        o_ref[...] = (acc_ref[...] + b2_ref[...]).astype(o_ref.dtype)


def prepare_mlp_params(w1, b1, w2, b2, *, param_dtype=jnp.bfloat16,
                       tk_target=512):
    """Pad/cast the parameters ONCE (hoisted out of the per-call path).

    w1: (emb, inter)   (= PyTorch dense.weight.T)
    b1: (inter,)
    w2: (inter, emb)   (= PyTorch output_proj.weight.T)
    b2: (emb,)
    Returns (w1p, b1p, w2p, b2p, tk) ready for mlp_layer().
    """
    E, I = w1.shape
    if I <= tk_target:
        tk = I                              # single chunk, no padding needed
    else:
        tk = _round_up(tk_target, 128)      # lane-aligned chunk width
    Ip = _round_up(I, tk)

    w1p = jnp.pad(w1, ((0, 0), (0, Ip - I))).astype(param_dtype)
    w2p = jnp.pad(w2, ((0, Ip - I), (0, 0))).astype(param_dtype)
    # zero-padded I columns: SiLU(0)=0 and the matching W2 rows are 0 → exact.
    b1p = jnp.pad(b1.astype(jnp.float32), (0, Ip - I)).reshape(1, Ip)
    b2p = b2.astype(jnp.float32).reshape(1, E)
    return w1p, b1p, w2p, b2p, tk


def mlp_layer(x, w1p, b1p, w2p, b2p, tk, *, tm=None):
    """ViT MLP block on prepared params: SiLU(x @ W1 + b1) @ W2 + b2.

    x: (batch, seq, emb); params from prepare_mlp_params().
    """
    B, S, E = x.shape
    Ip = w1p.shape[1]
    assert w1p.shape[0] == E and w2p.shape == (Ip, E) and Ip % tk == 0
    M = B * S
    out_dtype = x.dtype
    x2d = x.reshape(M, E)

    vmem_cap = _vmem_capacity_bytes()
    if tm is None:
        tm = 512 if vmem_cap >= (96 << 20) else 256   # 128-MiB chips vs v7x
    tm = min(tm, max(8, _round_up(M, 8)))
    # Keep both v7x TensorCores busy: >= 2 token-tile grid steps when possible.
    if M > 8 and pl.cdiv(M, tm) < 2:
        tm = max(8, _round_up(pl.cdiv(M, 2), 8))

    n_m = pl.cdiv(M, tm)
    n_k = Ip // tk

    # ---- VMEM footprint (double-buffered pipelined blocks + scratch) ------
    xb = x2d.dtype.itemsize
    ob = jnp.dtype(out_dtype).itemsize
    pb = w1p.dtype.itemsize
    footprint = (
        2 * tm * E * (xb + ob)            # x / o tiles (double-buffered)
        + 2 * (E * tk + tk * E) * pb      # W1 / W2 chunks (double-buffered)
        + 2 * 4 * (tk + E)                # b1 chunk / b2 (f32)
        + tm * E * 4                      # f32 accumulator scratch
        + tm * tk * 4                     # in-flight f32 h chunk
    )
    vmem_limit = int(min(max(footprint * 5 // 4 + (2 << 20), 16 << 20),
                         vmem_cap * 9 // 10))

    cost = pl.CostEstimate(
        flops=4 * M * E * Ip,                 # two matmuls: 2*M*E*I each
        transcendentals=M * Ip,               # sigmoid inside SiLU
        bytes_accessed=int(M * E * (xb + ob)
                           + (w1p.size + w2p.size) * pb
                           + 4 * (b1p.size + b2p.size)),
    )

    out2d = pl.pallas_call(
        mlp_kernel,
        out_shape=jax.ShapeDtypeStruct((M, E), out_dtype),
        grid_spec=pltpu.PrefetchScalarGridSpec(
            num_scalar_prefetch=0,
            grid=(n_m, n_k),                               # (token tiles, I chunks)
            in_specs=[
                pl.BlockSpec((tm, E), lambda i, k: (i, 0)),   # x tile
                pl.BlockSpec((E, tk), lambda i, k: (0, k)),   # W1 chunk
                pl.BlockSpec((1, tk), lambda i, k: (0, k)),   # b1 chunk
                pl.BlockSpec((tk, E), lambda i, k: (k, 0)),   # W2 chunk
                pl.BlockSpec((1, E), lambda i, k: (0, 0)),    # b2
            ],
            out_specs=pl.BlockSpec((tm, E), lambda i, k: (i, 0)),
            scratch_shapes=[pltpu.VMEM((tm, E), jnp.float32)],
        ),
        compiler_params=pltpu.CompilerParams(
            dimension_semantics=("parallel", "arbitrary"),
            vmem_limit_bytes=vmem_limit,
        ),
        cost_estimate=cost,
    )(x2d, w1p, b1p, w2p, b2p)

    return out2d.reshape(B, S, E)


if __name__ == "__main__":
    # Small shapes consistent with the module: batch=2, seq=8, emb=32, inter=64
    B, S, E, I = 2, 8, 32, 64

    key = jax.random.PRNGKey(0)
    kx, kw1, kb1, kw2, kb2 = jax.random.split(key, 5)

    x = jax.random.normal(kx, (B, S, E), dtype=jnp.float32)
    # Parameters stored as (in, out) = PyTorch weight^T
    w1 = jax.random.normal(kw1, (E, I), dtype=jnp.float32) * 0.02
    b1 = jax.random.normal(kb1, (I,), dtype=jnp.float32) * 0.02
    w2 = jax.random.normal(kw2, (I, E), dtype=jnp.float32) * 0.02
    b2 = jax.random.normal(kb2, (E,), dtype=jnp.float32) * 0.02

    # One-time parameter layout/cast (bf16 MXU inputs, f32 biases).
    w1p, b1p, w2p, b2p, tk = prepare_mlp_params(w1, b1, w2, b2)

    out = mlp_layer(x, w1p, b1p, w2p, b2p, tk)
    jax.block_until_ready(out)

    # Reference in plain f32 JAX; bf16 MXU inputs -> relaxed tolerance.
    h_ref = x.reshape(B * S, E) @ w1 + b1
    h_ref = h_ref * jax.nn.sigmoid(h_ref)
    y_ref = (h_ref @ w2 + b2).reshape(B, S, E)
    assert out.shape == y_ref.shape
    assert jnp.allclose(out, y_ref, atol=1e-2, rtol=1e-2), "mismatch vs reference"

    print("KERNEL_OK")
</pallas_src>

<mosaic_0001>
module attributes {stable_mosaic.version = 11 : i64} {
  func.func @mlp_kernel(%arg0: i32, %arg1: i32, %arg2: memref<8x32xf32, #tpu.memory_space<vmem>>, %arg3: memref<32x64xbf16, #tpu.memory_space<vmem>>, %arg4: memref<1x64xf32, #tpu.memory_space<vmem>>, %arg5: memref<64x32xbf16, #tpu.memory_space<vmem>>, %arg6: memref<1x32xf32, #tpu.memory_space<vmem>>, %arg7: memref<8x32xf32, #tpu.memory_space<vmem>>, %arg8: memref<8x32xf32, #tpu.memory_space<vmem>>) attributes {dimension_semantics = [#tpu.dimension_semantics<parallel>, #tpu.dimension_semantics<arbitrary>], iteration_bounds = array<i64: 2, 1>, scalar_prefetch = 0 : i64, scratch_operands = 1 : i64, tpu.core_type = #tpu.core_type<tc>, window_params = [{transform_indices = @transform_0, window_bounds = array<i64: 8, 32>}, {transform_indices = @transform_1, window_bounds = array<i64: 32, 64>}, {transform_indices = @transform_2, window_bounds = array<i64: 1, 64>}, {transform_indices = @transform_3, window_bounds = array<i64: 64, 32>}, {pipeline_mode = #tpu.pipeline_mode<synchronous>, transform_indices = @transform_4, window_bounds = array<i64: 1, 32>}, {transform_indices = @transform_5, window_bounds = array<i64: 8, 32>}]} {
    %c0_i32 = arith.constant 0 : i32
    %0 = arith.cmpi eq, %arg1, %c0_i32 : i32
    %1 = arith.extui %0 : i1 to i32
    %c0_i32_0 = arith.constant 0 : i32
    %2 = arith.cmpi ne, %1, %c0_i32_0 : i32
    scf.if %2 {
      %cst_16 = arith.constant 0.000000e+00 : f32
      %25 = vector.broadcast %cst_16 : f32 to vector<8x32xf32>
      %c0_17 = arith.constant 0 : index
      %c0_18 = arith.constant 0 : index
      %26 = vector.load %arg8[%c0_17, %c0_18] : memref<8x32xf32, #tpu.memory_space<vmem>>, vector<8x32xf32>
      tpu.vector_store %arg8[%c0_17, %c0_18], %25 {strides = array<i32>} : memref<8x32xf32, #tpu.memory_space<vmem>>, vector<8x32xf32>,
    } else {
    }
    %c0 = arith.constant 0 : index
    %c0_1 = arith.constant 0 : index
    %3 = vector.load %arg2[%c0, %c0_1] : memref<8x32xf32, #tpu.memory_space<vmem>>, vector<8x32xf32>
    %4 = arith.truncf %3 : vector<8x32xf32> to vector<8x32xbf16>
    %c0_2 = arith.constant 0 : index
    %c0_3 = arith.constant 0 : index
    %5 = vector.load %arg3[%c0_2, %c0_3] : memref<32x64xbf16, #tpu.memory_space<vmem>>, vector<32x64xbf16>
    %cst = arith.constant dense<0.000000e+00> : vector<8x64xf32>
    %6 = tpu.matmul %4, %5, %cst {dimension_numbers = #tpu.dot_dimension_numbers<[1], [0], [0], [1], [0, 0, 1, 1], [], []>} : vector<8x32xbf16>, vector<32x64xbf16>, vector<8x64xf32> -> vector<8x64xf32>
    %c0_4 = arith.constant 0 : index
    %c0_5 = arith.constant 0 : index
    %7 = vector.load %arg4[%c0_4, %c0_5] : memref<1x64xf32, #tpu.memory_space<vmem>>, vector<1x64xf32>
    %8 = vector.broadcast %7 : vector<1x64xf32> to vector<8x64xf32>
    %9 = arith.addf %6, %8 : vector<8x64xf32>
    %10 = arith.negf %9 : vector<8x64xf32>
    %11 = math.exp %10 : vector<8x64xf32>
    %cst_6 = arith.constant 1.000000e+00 : f32
    %12 = vector.broadcast %cst_6 : f32 to vector<8x64xf32>
    %13 = arith.addf %12, %11 : vector<8x64xf32>
    %14 = arith.divf %12, %13 : vector<8x64xf32>
    %15 = arith.mulf %9, %14 : vector<8x64xf32>
    %c0_7 = arith.constant 0 : index
    %c0_8 = arith.constant 0 : index
    %16 = vector.load %arg8[%c0_7, %c0_8] : memref<8x32xf32, #tpu.memory_space<vmem>>, vector<8x32xf32>
    %17 = arith.truncf %15 : vector<8x64xf32> to vector<8x64xbf16>
    %c0_9 = arith.constant 0 : index
    %c0_10 = arith.constant 0 : index
    %18 = vector.load %arg5[%c0_9, %c0_10] : memref<64x32xbf16, #tpu.memory_space<vmem>>, vector<64x32xbf16>
    %cst_11 = arith.constant dense<0.000000e+00> : vector<8x32xf32>
    %19 = tpu.matmul %17, %18, %cst_11 {dimension_numbers = #tpu.dot_dimension_numbers<[1], [0], [0], [1], [0, 0, 1, 1], [], []>} : vector<8x64xbf16>, vector<64x32xbf16>, vector<8x32xf32> -> vector<8x32xf32>
    %20 = arith.addf %16, %19 : vector<8x32xf32>
    %c0_12 = arith.constant 0 : index
    %c0_13 = arith.constant 0 : index
    %21 = vector.load %arg8[%c0_12, %c0_13] : memref<8x32xf32, #tpu.memory_space<vmem>>, vector<8x32xf32>
    tpu.vector_store %arg8[%c0_12, %c0_13], %20 {strides = array<i32>} : memref<8x32xf32, #tpu.memory_space<vmem>>, vector<8x32xf32>,
    %c0_i32_14 = arith.constant 0 : i32
    %22 = arith.cmpi eq, %arg1, %c0_i32_14 : i32
    %23 = arith.extui %22 : i1 to i32
    %c0_i32_15 = arith.constant 0 : i32
    %24 = arith.cmpi ne, %23, %c0_i32_15 : i32
    scf.if %24 {
      %c0_16 = arith.constant 0 : index
      %c0_17 = arith.constant 0 : index
      %25 = vector.load %arg8[%c0_16, %c0_17] : memref<8x32xf32, #tpu.memory_space<vmem>>, vector<8x32xf32>
      %c0_18 = arith.constant 0 : index
      %c0_19 = arith.constant 0 : index
      %26 = vector.load %arg6[%c0_18, %c0_19] : memref<1x32xf32, #tpu.memory_space<vmem>>, vector<1x32xf32>
      %27 = vector.broadcast %26 : vector<1x32xf32> to vector<8x32xf32>
      %28 = arith.addf %25, %27 : vector<8x32xf32>
      %c0_20 = arith.constant 0 : index
      %c0_21 = arith.constant 0 : index
      %29 = vector.load %arg7[%c0_20, %c0_21] : memref<8x32xf32, #tpu.memory_space<vmem>>, vector<8x32xf32>
      tpu.vector_store %arg7[%c0_20, %c0_21], %28 {strides = array<i32>} : memref<8x32xf32, #tpu.memory_space<vmem>>, vector<8x32xf32>,
    } else {
    }
    return
  }
  func.func @transform_0(%arg0: i32, %arg1: i32) -> (i32, i32) {
    %c0_i32 = arith.constant 0 : i32
    %c0_i32_0 = arith.constant 0 : i32
    return %arg0, %c0_i32 : i32, i32
  }
  func.func @transform_1(%arg0: i32, %arg1: i32) -> (i32, i32) {
    %c0_i32 = arith.constant 0 : i32
    %c0_i32_0 = arith.constant 0 : i32
    return %c0_i32, %arg1 : i32, i32
  }
  func.func @transform_2(%arg0: i32, %arg1: i32) -> (i32, i32) {
    %c0_i32 = arith.constant 0 : i32
    %c0_i32_0 = arith.constant 0 : i32
    return %c0_i32, %arg1 : i32, i32
  }
  func.func @transform_3(%arg0: i32, %arg1: i32) -> (i32, i32) {
    %c0_i32 = arith.constant 0 : i32
    %c0_i32_0 = arith.constant 0 : i32
    return %arg1, %c0_i32 : i32, i32
  }
  func.func @transform_4(%arg0: i32, %arg1: i32) -> (i32, i32) {
    %c0_i32 = arith.constant 0 : i32
    %c0_i32_0 = arith.constant 0 : i32
    %c0_i32_1 = arith.constant 0 : i32
    return %c0_i32, %c0_i32_0 : i32, i32
  }
  func.func @transform_5(%arg0: i32, %arg1: i32) -> (i32, i32) {
    %c0_i32 = arith.constant 0 : i32
    %c0_i32_0 = arith.constant 0 : i32
    return %arg0, %c0_i32 : i32, i32
  }
}

</mosaic_0001>

<bundles_post_ra>
// kernel: tpu_custom_call.1
= control target key start
LH: loop header
LB: loop body
LE: loop exit
PB: predicated region body
PF: predicated region fallthrough
CT: control target
= control target key end

     0   :  { %10 = vsyncpa [#allocation4], 0  ;;  %s957_s0 = inlined_call_operand.vmem [shape: f32[16,32], index: 0, kind: input, shape index: {}]   ;;  %s958_s1 = inlined_call_operand.vmem [shape: bf16[32,64], index: 1, kind: input, shape index: {}]   ;;  %s959_s2 = inlined_call_operand.vmem [shape: f32[1,64], index: 2, kind: input, shape index: {}]   ;;  %s960_s3 = inlined_call_operand.vmem [shape: bf16[64,32], index: 3, kind: input, shape index: {}]   ;;  %s961_s4 = inlined_call_operand.vmem [shape: f32[1,32], index: 4, kind: input, shape index: {}]   ;;  %s962_s5 = inlined_call_operand.hbm [shape: f32[16,32], index: 5, kind: output, shape index: {}]  }
   0x1   :  { %12 = vsyncpa [#allocation4 + $0x1], 0  ;;  %s817_s18 = smov 0   ;;  %s819_s19 = smov 0  }
   0x2   :  { %s821_s20 = smov 0   ;;  %s823_s21 = smov 0  }
   0x3   :  { %s825_s22 = smov 0   ;;  %s827_s23 = smov 0  }
   0x4 LB: > { %s584_s24 = sadd.s32 4294967295, %s782_s23   ;;  %s585_s25 = sadd.s32 4294967294, %s782_s23   ;;  %s782_s23 = sphi %s827_s23, %s18_s23   ;;  %s778_s22 = sphi %s825_s22, %s969_s22   ;;  %s774_s21 = sphi %s823_s21, %s968_s21   ;;  %s770_s20 = sphi %s821_s20, %s967_s20   ;;  %s766_s19 = sphi %s819_s19, %s966_s19   ;;  %s762_s18 = sphi %s817_s18, %s965_s18  }
   0x5   : > { %s30_s26 = sadd.s32 1, %s778_s22  ;;  %s162_s27 = sadd.s32 1, %s770_s20 }
   0x6   : > { %p32_p0 = scmp.ge.s32.totalorder %s30_s26, 2  ;;  %p172_p1 = scmp.ne.s32.totalorder %s770_s20, %s766_s19 }
   0x7   : > { %p173_p2 = scmp.eq.s32.totalorder %s584_s24, 1  ;;  %p178_p3 = scmp.ne.s32.totalorder %s766_s19, %s762_s18 }
   0x8   : > { %s971_s26 = smov (%p32_p0, %s30_s26), 0  ;;  %p179_p5 = scmp.eq.s32.totalorder %s585_s25, 1 }
   0x9   : > { %p857_p4 = por %p173_p2, %p172_p1  ;;  %s159_s29 = ssub.s32 %s778_s22, %s971_s26 }
   0xa   : > { %p591_p6 = scmp.ge.s32.totalorder %s782_s23, 1  ;;  %p160_p7 = scmp.eq.s32.totalorder %s159_s29, 0 }
   0xb   : > { %p864_p8 = por %p179_p5, %p178_p3  ;;  %p229_p9 = scmp.lt.s32.totalorder %s782_s23, 3 }
   0xc   : > { %s870_s6 = scalar_select %p160_p7, %s770_s20, %s162_s27  }
   0xd   : > { %p230_p10 = pnand %p591_p6, %p229_p9 }
   0xe   : > { %v694_v0 = vld [vmem:[%s958_s1] sm:$0xff] (!%p230_p10)   ;;  %v784_v1 = vmov (!%p230_p10), 0.0   ;;  %v695_v2 = vld [vmem:[%s958_s1 + $0x8] sm:$0xff] (!%p230_p10)   ;;  %vm785_vm0 = vmmov (!%p230_p10), 0   ;;  %p268_p11 = scmp.lt.s32.totalorder (!%p230_p10), %s774_s21, 1  ;;  %vm290_vm1 = vcmask (!%p230_p10), 261120  }
   0xf   : > { %233 = sbr.rel (%p230_p10) target bundleno = 511 (0x1ff), region = 40  ;;  %617 = vmatprep.subr.bf16.mxu0 (!%p230_p10), %v784_v1  ;;  %625 = vmatprep.subr.bf16.mxu1 (!%p230_p10), %v784_v1  ;;  %291 = vst.msk [vmem:[#allocation2] sm:$0xff] (!%p230_p10), %vm290_vm1, %v784_v1  ;;  %v696_v5 = vld [vmem:[%s960_s3] sm:$0xff] (!%p230_p10)   ;;  %v697_v6 = vld [vmem:[%s960_s3 + $0x8] sm:$0xff] (!%p230_p10)   ;;  %v698_v7 = vld [vmem:[%s960_s3 + $0x10] sm:$0xff] (!%p230_p10)   ;;  %vm402_vm2 = vcmask (!%p230_p10), 523264  }
  0x10   : > { %618 = vmatpush3.bf16.msra.mxu0 (!%p230_p10), %v694_v0  ;;  %621 = vmatprep.mubr.msk.bf16.mxu0 (!%p230_p10), %vm785_vm0, %v784_v1  ;;  %v699_v8 = vld [vmem:[%s960_s3 + $0x18] sm:$0xff] (!%p230_p10)   ;;  %v594_v9 = vld [vmem:[%s959_s2] ss:$0 sm:$0xff] (!%p230_p10) }
  0x11   : > { %619 = vmatprep.subr.bf16.mxu0 (!%p230_p10), %v784_v1  ;;  %633 = vmatprep.mubr.msk.bf16.mxu1 (!%p230_p10), %vm785_vm0, %v784_v1  ;;  %v604_v27 = vld [vmem:[%s961_s4] ss:$0 sm:$0xff] (!%p230_p10) }
  0x12   : > { %626 = vmatpush3.bf16.msra.mxu1 (!%p230_p10), %v696_v5 }
  0x13   : > { %627 = vmatprep.subr.bf16.mxu1 (!%p230_p10), %v784_v1 }
  0x14   : > { %620 = vmatpush3.bf16.msra.mxu0 (!%p230_p10), %v695_v2 }
  0x16   : > { %s269_s11 = scalar_select %p268_p11, %s774_s21, 1  ;;  %628 = vmatpush3.bf16.msra.mxu1 %v697_v6  ;;  %v368_v21 = vld [vmem:[#allocation2] sm:$0xff] }
  0x17   : > { %629 = vmatprep.subr.bf16.mxu1 %v784_v1 }
  0x18   : > { %s593_s12 = sshll.u32 %s269_s11, 3  ;;  %s265_s11 = sand.u32 1, %s766_s19  }
  0x19   : > { %s271_s15 = scalar_lea.vmem %s957_s0, %s593_s12  ;;  %s592_s12 = sshll.u32 %s265_s11, 3 }
  0x1a   : > { %v292_v3 = vld [vmem:[%s271_s15] sm:$0xff]  ;;  %630 = vmatpush3.bf16.msra.mxu1 %v698_v7  ;;  %s606_s15 = sshll.u32 %s774_s21, 7  ;;  %s267_s16 = scalar_lea.vmem [#allocation3], %s592_s12 }
  0x1b   : > { %v293_v4 = vpack.c.bf16 %v292_v3, %v292_v3  ;;  %631 = vmatprep.subr.bf16.mxu1 %v784_v1  ;;  %s475_s17 = sshll.u32 %s267_s16, 4  ;;  %s909_s27 = scalar_lea.hbm %s962_s5, %s606_s15  ;;  %s911_s17 = int_to_ptr.vmem [resolvable:$true] %s475_s17 }
  0x1c   : > { %s462_s29 = scalar_lea.sflag [#allocation4], %s265_s11  ;;  %s704_s7 = scalar_lea.vmem %s911_s17, 128 }
  0x1d   : > { %622 = vmatmul.mubr.msk.bf16.vlgmr.msra.gmra.mrb[0].mxu0 %vm290_vm1, %v293_v4  ;;  %p705_p12 = scmp.ne.s32.totalorder %s911_s17, %s704_s7  ;;  %s786_s21 = smov [#allocation3]  }
  0x1e   : > { %632 = vmatpush3.bf16.msra.mxu1 %v699_v8  ;;  %s708_s8 = sshll.u32 %s786_s21, 4  ;;  %s709_s8 = int_to_ptr.vmem [resolvable:$false] %s708_s8 }
  0x1f   : > { %p706_p13 = pnand %p705_p12, %p857_p4  ;;  %s710_s9 = scalar_lea.vmem %s709_s8, 256 }
  0x20   : > { %p711_p1 = scmp.lt.s32.totalorder %s911_s17, %s709_s8  ;;  %p712_p2 = scmp.lt.s32.totalorder %s710_s9, %s704_s7 }
  0x21   : > { %p707_p0 = pneg %p706_p13 }
  0x22   : > { %p713_p3 = por %p712_p2, %p711_p1 }
  0x24   : > { %p714_p5 = pnand %p713_p3, %p707_p0 }
  0xf0   : > { %v355_v10 = vpop.f32.mrb[0].mxu0 }
  0xf1   : > { %v356_v11 = vadd.f32 %v594_v9, %v355_v10  ;;  %v623_v12 = vpop.f32.mrb[1].mxu0 }
  0xf2   : > { %v358_v13 = vpop.f32.mrb[2].mxu0 }
  0xf3   : > { %v598_v14 = vmul.f32 -1.442695, %v356_v11  ;;  %v624_v15 = vpop.f32.mrb[3].mxu0 }
  0xf5   : > { %700 = vpow2.f32 %v598_v14 }
  0xff   : > { %v701_v16 = vpop.eup %700 }
 0x100   : > { %v364_v17 = vadd.f32 1.0, %v701_v16 }
 0x102   : > { %702 = vrcp.f32 %v364_v17 }
 0x10c   : > { %v703_v18 = vpop.eup %702 }
 0x10d   : > { %v367_v19 = vmul.f32 %v703_v18, %v356_v11 }
 0x10f   : > { %v369_v20 = vpack.c.bf16 %v367_v19, %v367_v19 }
 0x111   : > { %634 = vmatmul.mubr.msk.bf16.vlgmr.msra.gmra.mrb[0].mxu1 %vm402_vm2, %v369_v20 }
 0x1e4   : > { %v440_v22 = vpop.f32.mrb[0].mxu1 }
 0x1e5   : > { %v446_v23 = vadd.f32 %v440_v22, %v368_v21  ;;  %v635_v24 = vpop.f32.mrb[1].mxu1 }
 0x1e6   : > { %v443_v25 = vpop.f32.mrb[2].mxu1 }
 0x1e7   : > { %447 = vst.msk [vmem:[#allocation2] sm:$0xff] %vm290_vm1, %v446_v23  ;;  %v636_v26 = vpop.f32.mrb[3].mxu1 }
 0x1ee   : > { %v451_v28 = vld [vmem:[#allocation2] sm:$0xff] }
 0x1ef   : > { %v459_v29 = vadd.f32 %v604_v27, %v451_v28 }
 0x1f1   : > { %460 = vst.msk [vmem:[%s267_s16] sm:$0xff] %vm290_vm1, %v459_v29 }
 0x1f2   : > { %717 = shalt.err (!%p714_p5)
}
 0x1f3   : > { %s718_s10 = scalar_lea.hbm %s909_s27, 128  ;;  %s722_s13 = scalar_lea.hbm %s962_s5, 256 }
 0x1f4   : > { %p719_p6 = scmp.ne.s32.totalorder %s909_s27, %s718_s10  ;;  %p723_p10 = scmp.lt.u32.totalorder %s909_s27, %s962_s5 }
 0x1f5   : > { %p724_p11 = scmp.lt.u32.totalorder %s722_s13, %s718_s10  ;;  %p726_p13 = scmp.lt.u32.totalorder %s718_s10, %s909_s27 }
 0x1f6   : > { %p720_p7 = pnand %p719_p6, %p857_p4 }
 0x1f7   : > { %p725_p12 = por %p724_p11, %p723_p10 }
 0x1f8   : > { %p721_p9 = pneg %p720_p7 }
 0x1f9   : > { %p727_p0 = por %p726_p13, %p725_p12 }
 0x1fb   : > { %p728_p1 = pnand %p727_p0, %p721_p9 }
 0x1fd   : > { %731 = shalt.err (!%p728_p1)
}
 0x1fe   : > { %637 = dma.vmem_to_hbm [thread:$0]  (%p857_p4), %s911_s17, 128, %s909_s27, %s462_s29  }
 0x1ff PF: > { %p643_p2 = scmp.ge.s32.totalorder %s782_s23, 2  ;;  %s487_s16 = sand.u32 1, %s762_s18  }
 0x200   : > { %s488_s24 = scalar_lea.sflag [#allocation4], %s487_s16 }
 0x201   : > { %p640_p3 = pnand %p643_p2, %p864_p8 }
 0x203   : > { %757 = dma.done.wait (!%p640_p3), %s488_s24, 128  }
 0x204   : > { %759 = vsyncadd (!%p640_p3), %s488_s24, 4294967168  ;;  %s18_s23 = sadd.s32 1, %s782_s23   ;;  %s965_s18 = smov %s766_s19 }
 0x205   : > { %p15_p5 = scmp.ge.s32.totalorder %s18_s23, 4   ;;  %s966_s19 = smov %s770_s20 }
 0x206   : > { %s967_s20 = smov %s870_s6  ;;  %s968_s21 = smov %s778_s22 }
 0x207   : > { %s969_s22 = smov %s971_s26  ;;  %17 = sbr.rel (!%p15_p5) target bundleno = 4 (0x4), region = 92 }
 0x20e   :  { %493 = vsyncpa [#allocation4], 1 }
 0x20f   :  { %495 = vsyncpa [#allocation4 + $0x1], 1 }

</bundles_post_ra>
